<compile_context>
chip_gen: v6e
topology: v6e:2x2x1
jax: 0.10.0
libtpu: 0.0.40
codegen_flags: <defaults>
</compile_context>

<pallas_src>
import functools

import jax
import jax.numpy as jnp
from jax import lax
from jax.experimental import pallas as pl
from jax.experimental.pallas import tpu as pltpu

_LANES = 128


def _round_up(x, m):
    return ((x + m - 1) // m) * m


def _num_tensorcores():
    """2 on dual-TC chips (v7x), 1 otherwise (v5e / v6e are single-TC)."""
    try:
        kind = jax.devices()[0].device_kind.lower()
    except Exception:
        return 1
    return 2 if ("v7" in kind or "7x" in kind) else 1


def _mse_partial_kernel(x_ref, y_ref, o_ref, *,
                        steps, tile_rows, lanes, body_rows, num_blocks,
                        has_partial, has_duplicate):
    c = pl.program_id(0)   # core-split axis ("parallel")
    j = pl.program_id(1)   # reduction axis over row blocks ("arbitrary")

    @pl.when(j == 0)
    def _():
        o_ref[...] = jnp.zeros_like(o_ref)

    d = x_ref[...].astype(jnp.float32) - y_ref[...].astype(jnp.float32)
    sq = d * d

    def accumulate(vals):
        # Row-group reduce only: pure VPU adds of (8, lanes) vregs; the single
        # cross-lane (XLU) reduce + divide happens once, outside the kernel.
        o_ref[...] += vals.reshape(tile_rows // 8, 8, lanes).sum(axis=0)

    if not has_partial and not has_duplicate:
        # Every step is a full, valid block: never pay the mask.
        accumulate(sq)
    else:
        block = c * steps + j          # logical block id
        last = num_blocks - 1          # static

        @pl.when(block < last)
        def _():
            accumulate(sq)             # interior blocks: unmasked

        @pl.when(block == last)
        def _():
            if has_partial:
                # Partial edge block: suppress un-DMA'd (garbage) rows with a
                # select (NaN/Inf safe). Rows only; the lane tail is handled
                # outside the kernel, so no lane iota is needed.
                row = lax.broadcasted_iota(jnp.int32, (tile_rows, lanes), 0)
                valid = (last * tile_rows + row) < body_rows
                accumulate(jnp.where(valid, sq, 0.0))
            else:
                accumulate(sq)

        # block > last: clamped duplicate step (only when n_split=2 and
        # num_blocks is odd) -> contributes nothing.


def mse_loss(inputs, targets, *, target_block_bytes=1 << 20):
    """Mean squared error over all elements (matches nn.MSELoss default)."""
    assert inputs.shape == targets.shape, "MSELoss requires matching shapes"

    out_dtype = jnp.promote_types(inputs.dtype, targets.dtype)
    if not jnp.issubdtype(out_dtype, jnp.floating):
        out_dtype = jnp.float32

    n = inputs.size
    if n == 0:
        # torch's nn.MSELoss on empty input yields NaN (mean of nothing).
        return jnp.array(jnp.nan, dtype=out_dtype)

    lanes = _LANES
    x = inputs.reshape(-1)            # native dtype; cast happens in-kernel
    y = targets.reshape(-1)

    body_rows, rem = divmod(n, lanes)

    # <128-element ragged tail: tiny plain-JAX op instead of a full-tensor pad.
    tail_sum = jnp.float32(0.0)
    if rem:
        xt = x[body_rows * lanes:].astype(jnp.float32)
        yt = y[body_rows * lanes:].astype(jnp.float32)
        tail_sum = jnp.sum((xt - yt) ** 2)

    if body_rows == 0:
        return (tail_sum / n).astype(out_dtype)

    xb = x[:body_rows * lanes]
    yb = y[:body_rows * lanes]

    # Genuinely tiny tensors: zero-pad the body to one 32-row block.
    # Zero-padded rows contribute exactly 0 to the sum, so no mask is needed.
    if body_rows < 32:
        pad = 32 * lanes - body_rows * lanes
        xb = jnp.pad(xb, (0, pad))
        yb = jnp.pad(yb, (0, pad))
        body_rows = 32

    x2 = xb.reshape(body_rows, lanes)
    y2 = yb.reshape(body_rows, lanes)

    # Dtype-aware tile: keep each input DMA block ~1 MiB so every dtype sits
    # near the HBM roofline (2048 rows f32 / 4096 bf16 / 8192 int8-fp8).
    # Rounded *down* to the array rows so the block never exceeds the array.
    itemsize = max(jnp.dtype(inputs.dtype).itemsize,
                   jnp.dtype(targets.dtype).itemsize)
    dtype_tile_rows = max(32, (target_block_bytes // (lanes * itemsize)) // 32 * 32)
    tile_rows = min(dtype_tile_rows, (body_rows // 32) * 32)

    num_blocks = pl.cdiv(body_rows, tile_rows)
    # Two-way split only on dual-TensorCore chips; serial (and skipped) elsewhere.
    n_split = min(_num_tensorcores(), num_blocks)
    steps = pl.cdiv(num_blocks, n_split)

    has_partial = (body_rows % tile_rows) != 0        # static
    has_duplicate = (n_split * steps) != num_blocks   # static

    def in_map(c, j):
        # Clamp so the (at most one) duplicate step never DMAs out of bounds;
        # the kernel skips its accumulation entirely.
        return (jnp.minimum(c * steps + j, num_blocks - 1), 0)

    kernel = functools.partial(
        _mse_partial_kernel,
        steps=steps, tile_rows=tile_rows, lanes=lanes, body_rows=body_rows,
        num_blocks=num_blocks, has_partial=has_partial,
        has_duplicate=has_duplicate)

    partials = pl.pallas_call(
        kernel,
        out_shape=jax.ShapeDtypeStruct((n_split, 8, lanes), jnp.float32),
        grid_spec=pltpu.PrefetchScalarGridSpec(
            num_scalar_prefetch=0,
            grid=(n_split, steps),
            in_specs=[
                pl.BlockSpec((tile_rows, lanes), in_map),
                pl.BlockSpec((tile_rows, lanes), in_map),
            ],
            # Output block index ignores j -> VMEM-resident accumulator across
            # the reduction axis; no separate scratch buffer needed.
            out_specs=pl.BlockSpec((None, 8, lanes), lambda c, j: (c, 0, 0)),
        ),
        compiler_params=pltpu.CompilerParams(
            dimension_semantics=("parallel", "arbitrary")),
    )(x2, y2)

    # One tiny final cross-lane reduce + divide outside the kernel.
    total = jnp.sum(partials) + tail_sum
    return (total / n).astype(out_dtype)


if __name__ == "__main__":
    key = jax.random.PRNGKey(0)
    k1, k2, k3, k4 = jax.random.split(key, 4)

    # 1) Small NCHW-style tensors, consistent with a typical loss input.
    shape = (2, 4, 16, 16)
    inputs = jax.random.normal(k1, shape, dtype=jnp.float32)
    targets = jax.random.normal(k2, shape, dtype=jnp.float32)
    loss = mse_loss(inputs, targets)
    jax.block_until_ready(loss)
    ref = jnp.mean((inputs - targets) ** 2)
    assert jnp.allclose(loss, ref, rtol=1e-5, atol=1e-6), (loss, ref)

    # 2) Small ragged shape: exercises the masked partial edge block and the
    #    <128-element tail path (no full-tensor pad).
    shape2 = (3, 50, 129)
    a = jax.random.normal(k3, shape2, dtype=jnp.float32)
    b = jax.random.normal(k4, shape2, dtype=jnp.float32)
    loss2 = mse_loss(a, b)
    jax.block_until_ready(loss2)
    ref2 = jnp.mean((a - b) ** 2)
    assert jnp.allclose(loss2, ref2, rtol=1e-5, atol=1e-6), (loss2, ref2)

    print("KERNEL_OK")
</pallas_src>

<mosaic_0001>
module attributes {stable_mosaic.version = 11 : i64} {
  func.func @_mse_partial_kernel(%arg0: i32, %arg1: i32, %arg2: memref<32x128xf32, #tpu.memory_space<vmem>>, %arg3: memref<32x128xf32, #tpu.memory_space<vmem>>, %arg4: memref<1x8x128xf32, #tpu.memory_space<vmem>>) attributes {dimension_semantics = [#tpu.dimension_semantics<parallel>, #tpu.dimension_semantics<arbitrary>], iteration_bounds = array<i64: 1, 1>, scalar_prefetch = 0 : i64, scratch_operands = 0 : i64, tpu.core_type = #tpu.core_type<tc>, window_params = [{transform_indices = @transform_0, window_bounds = array<i64: 32, 128>}, {transform_indices = @transform_1, window_bounds = array<i64: 32, 128>}, {transform_indices = @transform_2, window_bounds = array<i64: 1, 8, 128>}]} {
    %c0_i32 = arith.constant 0 : i32
    %0 = arith.cmpi eq, %arg1, %c0_i32 : i32
    %1 = arith.extui %0 : i1 to i32
    %c0_i32_0 = arith.constant 0 : i32
    %2 = arith.cmpi ne, %1, %c0_i32_0 : i32
    scf.if %2 {
      %cst_10 = arith.constant 0.000000e+00 : f32
      %15 = vector.broadcast %cst_10 : f32 to vector<8x128xf32>
      %c0_11 = arith.constant 0 : index
      %c0_12 = arith.constant 0 : index
      %c0_13 = arith.constant 0 : index
      %16 = vector.load %arg4[%c0_11, %c0_12, %c0_13] : memref<1x8x128xf32, #tpu.memory_space<vmem>>, vector<1x8x128xf32>
      %17 = vector.shape_cast %16 : vector<1x8x128xf32> to vector<8x128xf32>
      %18 = vector.shape_cast %15 : vector<8x128xf32> to vector<1x8x128xf32>
      tpu.vector_store %arg4[%c0_11, %c0_12, %c0_13], %18 {strides = array<i32>} : memref<1x8x128xf32, #tpu.memory_space<vmem>>, vector<1x8x128xf32>,
    } else {
    }
    %c0 = arith.constant 0 : index
    %c0_1 = arith.constant 0 : index
    %3 = vector.load %arg2[%c0, %c0_1] : memref<32x128xf32, #tpu.memory_space<vmem>>, vector<32x128xf32>
    %c0_2 = arith.constant 0 : index
    %c0_3 = arith.constant 0 : index
    %4 = vector.load %arg3[%c0_2, %c0_3] : memref<32x128xf32, #tpu.memory_space<vmem>>, vector<32x128xf32>
    %5 = arith.subf %3, %4 : vector<32x128xf32>
    %6 = arith.mulf %5, %5 : vector<32x128xf32>
    %c0_4 = arith.constant 0 : index
    %c0_5 = arith.constant 0 : index
    %c0_6 = arith.constant 0 : index
    %7 = vector.load %arg4[%c0_4, %c0_5, %c0_6] : memref<1x8x128xf32, #tpu.memory_space<vmem>>, vector<1x8x128xf32>
    %8 = vector.shape_cast %7 : vector<1x8x128xf32> to vector<8x128xf32>
    %9 = vector.shape_cast %6 : vector<32x128xf32> to vector<4x8x128xf32>
    %cst = arith.constant dense<0.000000e+00> : vector<8x128xf32>
    %10 = vector.multi_reduction <add>, %9, %cst [0] : vector<4x8x128xf32> to vector<8x128xf32>
    %11 = arith.addf %8, %10 : vector<8x128xf32>
    %c0_7 = arith.constant 0 : index
    %c0_8 = arith.constant 0 : index
    %c0_9 = arith.constant 0 : index
    %12 = vector.load %arg4[%c0_7, %c0_8, %c0_9] : memref<1x8x128xf32, #tpu.memory_space<vmem>>, vector<1x8x128xf32>
    %13 = vector.shape_cast %12 : vector<1x8x128xf32> to vector<8x128xf32>
    %14 = vector.shape_cast %11 : vector<8x128xf32> to vector<1x8x128xf32>
    tpu.vector_store %arg4[%c0_7, %c0_8, %c0_9], %14 {strides = array<i32>} : memref<1x8x128xf32, #tpu.memory_space<vmem>>, vector<1x8x128xf32>,
    return
  }
  func.func @transform_0(%arg0: i32, %arg1: i32) -> (i32, i32) {
    %c1_i32 = arith.constant 1 : i32
    %0 = arith.muli %arg0, %c1_i32 : i32
    %1 = arith.addi %0, %arg1 : i32
    %c0_i32 = arith.constant 0 : i32
    %2 = arith.minsi %1, %c0_i32 : i32
    %c0_i32_0 = arith.constant 0 : i32
    %c0_i32_1 = arith.constant 0 : i32
    return %2, %c0_i32_0 : i32, i32
  }
  func.func @transform_1(%arg0: i32, %arg1: i32) -> (i32, i32) {
    %c1_i32 = arith.constant 1 : i32
    %0 = arith.muli %arg0, %c1_i32 : i32
    %1 = arith.addi %0, %arg1 : i32
    %c0_i32 = arith.constant 0 : i32
    %2 = arith.minsi %1, %c0_i32 : i32
    %c0_i32_0 = arith.constant 0 : i32
    %c0_i32_1 = arith.constant 0 : i32
    return %2, %c0_i32_0 : i32, i32
  }
  func.func @transform_2(%arg0: i32, %arg1: i32) -> (i32, i32, i32) {
    %c0_i32 = arith.constant 0 : i32
    %c0_i32_0 = arith.constant 0 : i32
    %c0_i32_1 = arith.constant 0 : i32
    return %arg0, %c0_i32, %c0_i32_0 : i32, i32, i32
  }
}

</mosaic_0001>

<bundles_post_ra>
// kernel: tpu_custom_call.1
= control target key start
LH: loop header
LB: loop body
LE: loop exit
PB: predicated region body
PF: predicated region fallthrough
CT: control target
= control target key end

     0   :  { %7 = vsyncpa [#allocation3], 0  ;;  %s208_s0 = inlined_call_operand.hbm [shape: f32[32,128], index: 0, kind: input, shape index: {}]   ;;  %s209_s1 = inlined_call_operand.hbm [shape: f32[32,128], index: 1, kind: input, shape index: {}]   ;;  %s210_s2 = inlined_call_operand.hbm [shape: f32[1,8,128], index: 2, kind: output, shape index: {}]  }
   0x1   :  { %8 = vsyncpa [#allocation6], 0 }
   0x2   :  { %9 = vsyncpa [#allocation4], 0  ;;  %s179_s9 = smov [#allocation2]  }
   0x3   :  { %s21_s10 = sshll.u32 %s179_s9, 4  ;;  %s22_s10 = int_to_ptr.vmem [resolvable:$true] %s21_s10 }
   0x4   :  { %s121_s11 = scalar_lea.vmem %s22_s10, 512  ;;  %p126_p1 = scmp.lt.s32.totalorder %s22_s10, %s22_s10 }
   0x5   :  { %p122_p0 = scmp.ne.s32.totalorder %s22_s10, %s121_s11  ;;  %p127_p2 = scmp.lt.s32.totalorder %s121_s11, %s121_s11 }
   0x7   :  { %p128_p3 = por %p127_p2, %p126_p1 }
   0x9   :  { %p129_p4 = pnand %p128_p3, %p122_p0 }
   0xb   :  { %132 = shalt.err (!%p129_p4)
}
   0xc   :  { %s180_s12 = smov 128   ;;  %s181_s13 = smov 8  }
   0xd   :  { %27 = dma.hbm_to_vmem [thread:$0]  %s208_s0, 512, %s22_s10, [#allocation3], %s180_s12, %s180_s12, %s181_s13  }
   0xe   :  { %s182_s16 = smov [#allocation5]  }
   0xf   :  { %s39_s17 = sshll.u32 %s182_s16, 4  ;;  %s40_s17 = int_to_ptr.vmem [resolvable:$true] %s39_s17 }
  0x10   :  { %s141_s18 = scalar_lea.vmem %s40_s17, 512  ;;  %p146_p6 = scmp.lt.s32.totalorder %s40_s17, %s40_s17 }
  0x11   :  { %p142_p5 = scmp.ne.s32.totalorder %s40_s17, %s141_s18  ;;  %p147_p7 = scmp.lt.s32.totalorder %s141_s18, %s141_s18 }
  0x13   :  { %p148_p8 = por %p147_p7, %p146_p6 }
  0x15   :  { %p149_p9 = pnand %p148_p8, %p142_p5 }
  0x17   :  { %152 = shalt.err (!%p149_p9)
}
  0x18   :  { %45 = dma.hbm_to_vmem [thread:$0]  %s209_s1, 512, %s40_s17, [#allocation6], %s180_s12, %s180_s12, %s181_s13  }
  0x19   :  { %173 = dma.done.wait [#allocation3], 512  }
  0x1a   :  { %174 = vsyncadd [#allocation3], 4294966784 }
  0x1b   :  { %175 = dma.done.wait [#allocation6], 512  }
  0x1c   :  { %176 = vsyncadd [#allocation6], 4294966784  ;;  %v65_v0 = vld [vmem:[#allocation2] sm:$0xff]  ;;  %v66_v1 = vld [vmem:[#allocation2 + $0x8] sm:$0xff]  ;;  %s183_s0 = smov [#allocation7]  }
  0x1d   :  { %v67_v2 = vld [vmem:[#allocation2 + $0x10] sm:$0xff]  ;;  %v68_v3 = vld [vmem:[#allocation2 + $0x18] sm:$0xff]  ;;  %v69_v4 = vld [vmem:[#allocation5] sm:$0xff]  ;;  %s93_s1 = sshll.u32 %s183_s0, 4  ;;  %s94_s1 = int_to_ptr.vmem [resolvable:$true] %s93_s1 }
  0x1e   :  { %v70_v5 = vld [vmem:[#allocation5 + $0x8] sm:$0xff]  ;;  %v71_v6 = vld [vmem:[#allocation5 + $0x10] sm:$0xff]  ;;  %v72_v7 = vld [vmem:[#allocation5 + $0x18] sm:$0xff]  ;;  %v73_v8 = vsub.f32 %v65_v0, %v69_v4  ;;  %s153_s21 = scalar_lea.vmem %s94_s1, 128  ;;  %p158_p11 = scmp.lt.s32.totalorder %s94_s1, %s94_s1 }
  0x1f   :  { %v74_v9 = vsub.f32 %v66_v1, %v70_v5  ;;  %v75_v10 = vsub.f32 %v67_v2, %v71_v6  ;;  %v76_v11 = vsub.f32 %v68_v3, %v72_v7  ;;  %p154_p10 = scmp.ne.s32.totalorder %s94_s1, %s153_s21  ;;  %p159_p12 = scmp.lt.s32.totalorder %s153_s21, %s153_s21 }
  0x20   :  { %v77_v12 = vmul.f32 %v73_v8, %v73_v8 }
  0x21   :  { %v78_v13 = vmul.f32 %v74_v9, %v74_v9  ;;  %v79_v14 = vmul.f32 %v75_v10, %v75_v10  ;;  %v80_v15 = vmul.f32 %v76_v11, %v76_v11  ;;  %p160_p13 = por %p159_p12, %p158_p11 }
  0x23   :  { %v82_v16 = vadd.f32 %v78_v13, %v77_v12  ;;  %p161_p0 = pnand %p160_p13, %p154_p10 }
  0x25   :  { %v83_v17 = vadd.f32 %v82_v16, %v79_v14 }
  0x27   :  { %v84_v18 = vadd.f32 %v83_v17, %v80_v15 }
  0x29   :  { %86 = vst [vmem:[#allocation7] sm:$0xff] %v84_v18 }
  0x2a   :  { %164 = shalt.err (!%p161_p0)
}
  0x2b   :  { %96 = dma.vmem_to_hbm [thread:$0]  %s94_s1, 128, %s210_s2, [#allocation4]  }
  0x2c   :  { %177 = dma.done.wait [#allocation4], 128  }
  0x2d   :  { %178 = vsyncadd [#allocation4], 4294967168 }
  0x2e   :  { %100 = vsyncpa [#allocation3], 1 }
  0x2f   :  { %101 = vsyncpa [#allocation6], 1 }
  0x30   :  { %102 = vsyncpa [#allocation4], 1 }

</bundles_post_ra>
